<compile_context>
chip_gen: v7x
topology: tpu7x:2x2x1
jax: 0.10.0
libtpu: 0.0.40
codegen_flags: <defaults>
</compile_context>

<pallas_src>
import math
import functools

import jax
import jax.numpy as jnp
from jax.experimental import pallas as pl
from jax.experimental.pallas import tpu as pltpu


def _round_up(x, m):
    return ((x + m - 1) // m) * m


# ----------------------------- Pallas kernel --------------------------------
def _sp_attention_kernel(x_ref, wq_ref, wk_ref, wv_ref, bq_ref, bk_ref, bv_ref,
                         wproj_ref, bproj_ref, o_ref, k_scr, v_scr,
                         *, num_heads, scale, n_valid):
    # One (batch, q_tile) grid step.
    #   x_ref:        (Np, C)        bf16  full padded sequence of this batch elem
    #   wq/wk/wv_ref: (H, C, HDp)    bf16  per-head proj weights, hd padded to 128
    #   bq/bk/bv_ref: (H, 1, HDp)    f32
    #   wproj_ref:    (H, HDp, C)    bf16  per-head slice of the output projection
    #   bproj_ref:    (1, C)         f32
    #   o_ref:        (Tq, C)        f32   output tile (already final B,N,C layout)
    #   k_scr/v_scr:  (H, Np, HDp)   bf16  persistent VMEM scratch (filled at qi==0)
    qi = pl.program_id(1)
    n_pad, _ = x_ref.shape
    tq = o_ref.shape[0]
    cdt = k_scr.dtype                                   # bf16 MXU operand dtype

    # ---- K/V projection into persistent VMEM scratch: once per batch elem ----
    @pl.when(qi == 0)
    def _():
        xf = x_ref[...]                                 # (Np, C) bf16
        @pl.loop(0, num_heads)
        def _(h):
            k_scr[h] = (jnp.dot(xf, wk_ref[h], preferred_element_type=jnp.float32)
                        + bk_ref[h]).astype(cdt)
            v_scr[h] = (jnp.dot(xf, wv_ref[h], preferred_element_type=jnp.float32)
                        + bv_ref[h]).astype(cdt)

    # query rows of this tile (slice of the already-resident x block)
    q_start = pl.multiple_of(qi * tq, tq)
    x_q = x_ref[pl.ds(q_start, tq), :]                  # (Tq, C) bf16

    # key-padding mask as an additive (1, Np) lane row (only if padding exists)
    if n_pad != n_valid:
        key_idx = jax.lax.broadcasted_iota(jnp.int32, (1, n_pad), 1)
        key_bias = jnp.where(key_idx < n_valid, 0.0, -1e30).astype(jnp.float32)
    else:
        key_bias = None

    # output tile starts at the projection bias; heads accumulate into it, so
    # no concat / (Tq, H*hd) intermediate and no post-kernel transpose.
    o_ref[...] = jnp.broadcast_to(bproj_ref[...], o_ref.shape).astype(o_ref.dtype)

    @pl.loop(0, num_heads)
    def _(h):
        # q projection for this head (bf16 x bf16, f32 accumulation)
        q_h = (jnp.dot(x_q, wq_ref[h], preferred_element_type=jnp.float32)
               + bq_ref[h]) * scale                     # (Tq, HDp) f32
        # scores: bf16 operands on the MXU, f32 accumulation
        s = jax.lax.dot_general(q_h.astype(cdt), k_scr[h],
                                (((1,), (1,)), ((), ())),
                                preferred_element_type=jnp.float32)   # (Tq, Np)
        if key_bias is not None:
            s = s + key_bias
        # softmax in f32 (matches the torch .to(float32).softmax path)
        s = s - jnp.max(s, axis=-1, keepdims=True)
        p = jnp.exp(s)
        p = p * pl.reciprocal(jnp.sum(p, axis=-1, keepdims=True), approx=True)
        # attn @ v, then straight through this head's slice of Wproj
        o_h = jnp.dot(p.astype(cdt), v_scr[h],
                      preferred_element_type=jnp.float32)             # (Tq, HDp)
        o_ref[...] += jnp.dot(o_h.astype(cdt), wproj_ref[h],
                              preferred_element_type=jnp.float32).astype(o_ref.dtype)


# ------------------------------- wrapper -------------------------------------
def seq_parallel_attention_pallas(x, wq, wk, wv, bq, bk, bv, wproj, bproj,
                                  *, num_heads, scale, q_block=None):
    b, n, c = x.shape
    hdp = wq.shape[-1]

    # query tile: multiple of 8 sublanes, default capped at 256 rows
    if q_block is None:
        q_block = 256
    tq = _round_up(min(q_block, _round_up(n, 8)), 8)
    nq = pl.cdiv(n, tq)
    n_pad = nq * tq

    # bf16 at the call boundary halves x HBM<->VMEM traffic (output stays f32)
    x = x.astype(jnp.bfloat16)
    if n_pad != n:
        x = jnp.pad(x, ((0, 0), (0, n_pad - n), (0, 0)))

    kernel = functools.partial(_sp_attention_kernel, num_heads=num_heads,
                               scale=scale, n_valid=n)

    # VMEM budget: double-buffered blocks + single-buffered scratch + temporaries
    est = (2 * n_pad * c * 2                      # x block (bf16)
           + 2 * tq * c * 4                       # out block (f32)
           + 2 * 3 * num_heads * c * hdp * 2      # Wq/Wk/Wv
           + 2 * num_heads * hdp * c * 2          # Wproj
           + 2 * 3 * num_heads * hdp * 4          # biases
           + 2 * num_heads * n_pad * hdp * 2      # K/V scratch
           + 3 * tq * n_pad * 4                   # score/softmax temporaries
           + 2 * tq * hdp * 4 + tq * c * 4)       # per-head q / o temporaries
    vmem_limit = int(min(max(est * 3 // 2, 32 * 2 ** 20), 100 * 2 ** 20))

    out = pl.pallas_call(
        kernel,
        out_shape=jax.ShapeDtypeStruct((b, n_pad, c), jnp.float32),
        grid=(b, nq),
        in_specs=[
            pl.BlockSpec((None, n_pad, c), lambda i, j: (i, 0, 0)),      # x (per batch)
            pl.BlockSpec((num_heads, c, hdp), lambda i, j: (0, 0, 0)),   # Wq (resident)
            pl.BlockSpec((num_heads, c, hdp), lambda i, j: (0, 0, 0)),   # Wk
            pl.BlockSpec((num_heads, c, hdp), lambda i, j: (0, 0, 0)),   # Wv
            pl.BlockSpec((num_heads, 1, hdp), lambda i, j: (0, 0, 0)),   # bq
            pl.BlockSpec((num_heads, 1, hdp), lambda i, j: (0, 0, 0)),   # bk
            pl.BlockSpec((num_heads, 1, hdp), lambda i, j: (0, 0, 0)),   # bv
            pl.BlockSpec((num_heads, hdp, c), lambda i, j: (0, 0, 0)),   # Wproj
            pl.BlockSpec((1, c), lambda i, j: (0, 0)),                   # bproj
        ],
        out_specs=pl.BlockSpec((None, tq, c), lambda i, j: (i, j, 0)),
        scratch_shapes=[
            pltpu.VMEM((num_heads, n_pad, hdp), jnp.bfloat16),           # K scratch
            pltpu.VMEM((num_heads, n_pad, hdp), jnp.bfloat16),           # V scratch
        ],
        compiler_params=pltpu.CompilerParams(
            dimension_semantics=("parallel", "arbitrary"),
            vmem_limit_bytes=vmem_limit,
        ),
    )(x, wq, wk, wv, bq, bk, bv, wproj, bproj)

    if n_pad != n:
        out = out[:, :n, :]
    return out


# ------------------------------ Python module --------------------------------
class SeqParallelAttention:
    """JAX/Pallas port of OpenSora's SeqParallelAttention (single-device SP group)."""

    def __init__(self, dim, num_heads=8, qkv_bias=False, qk_norm=False,
                 attn_drop=0.0, proj_drop=0.0, enable_flashattn=False, key=None):
        assert dim % num_heads == 0, "dim should be divisible by num_heads"
        assert not qk_norm, "qk_norm=True not implemented (module default is False)"
        self.dim = dim
        self.num_heads = num_heads
        self.head_dim = dim // num_heads
        self.hd_pad = _round_up(self.head_dim, 128)      # 128-lane-aligned head slot
        self.scale = self.head_dim ** (-0.5)
        self.attn_drop = attn_drop                       # eval mode: identity
        self.proj_drop = proj_drop
        self.enable_flashattn = enable_flashattn

        if key is None:
            key = jax.random.PRNGKey(0)
        k1, k2, k3, k4 = jax.random.split(key, 4)
        lim = 1.0 / math.sqrt(dim)
        # canonical f32 parameters (used by the pure-JAX reference), y = x @ W + b
        self.wqkv = jax.random.uniform(k1, (dim, 3 * dim), jnp.float32, -lim, lim)
        if qkv_bias:
            self.bqkv = jax.random.uniform(k2, (3 * dim,), jnp.float32, -lim, lim)
        else:
            self.bqkv = jnp.zeros((3 * dim,), jnp.float32)
        self.wproj = jax.random.uniform(k3, (dim, dim), jnp.float32, -lim, lim)
        self.bproj = jax.random.uniform(k4, (dim,), jnp.float32, -lim, lim)

        # Kernel layouts: head-major with head_dim zero-padded to a multiple of
        # 128 lanes (padded q/k columns contribute 0 to scores; padded v cols /
        # Wproj rows are zero so they contribute 0 to the output). Weights bf16.
        h, hd, hdp = num_heads, self.head_dim, self.hd_pad

        def whm(w):   # (dim, h*hd) -> (h, dim, hdp) bf16
            w = w.reshape(dim, h, hd).transpose(1, 0, 2)
            return jnp.pad(w, ((0, 0), (0, 0), (0, hdp - hd))).astype(jnp.bfloat16)

        def bhm(bvec):   # (h*hd,) -> (h, 1, hdp) f32
            bvec = bvec.reshape(h, 1, hd)
            return jnp.pad(bvec, ((0, 0), (0, 0), (0, hdp - hd)))

        self._wq = whm(self.wqkv[:, :dim])
        self._wk = whm(self.wqkv[:, dim:2 * dim])
        self._wv = whm(self.wqkv[:, 2 * dim:])
        self._bq = bhm(self.bqkv[:dim])
        self._bk = bhm(self.bqkv[dim:2 * dim])
        self._bv = bhm(self.bqkv[2 * dim:])
        wp = self.wproj.reshape(h, hd, dim)
        self._wproj = jnp.pad(wp, ((0, 0), (0, hdp - hd), (0, 0))).astype(jnp.bfloat16)
        self._bproj = self.bproj.reshape(1, dim)

    def __call__(self, x, q_block=None):
        # single-device sequence-parallel group => all_to_all is the identity
        x = jnp.asarray(x, jnp.float32)
        return seq_parallel_attention_pallas(
            x, self._wq, self._wk, self._wv, self._bq, self._bk, self._bv,
            self._wproj, self._bproj,
            num_heads=self.num_heads, scale=self.scale, q_block=q_block)

    # pure-JAX reference mirroring the PyTorch math (full f32)
    def reference(self, x):
        x = jnp.asarray(x, jnp.float32)
        b, n, c = x.shape
        h, hd = self.num_heads, self.head_dim
        qkv = x @ self.wqkv + self.bqkv                     # (B, N, 3C)
        qkv = qkv.reshape(b, n, 3, h, hd)
        qkv = jnp.transpose(qkv, (2, 0, 3, 1, 4))           # (3, B, H, N, hd)
        q, k, v = qkv[0], qkv[1], qkv[2]
        attn = (q * self.scale) @ jnp.swapaxes(k, -2, -1)   # (B, H, N, N)
        attn = jax.nn.softmax(attn.astype(jnp.float32), axis=-1)
        xo = attn @ v                                       # (B, H, N, hd)
        xo = jnp.transpose(xo, (0, 2, 1, 3)).reshape(b, n, c)
        return xo @ self.wproj + self.bproj


if __name__ == "__main__":
    key = jax.random.PRNGKey(0)
    k_mod, k_x1, k_x2 = jax.random.split(key, 3)

    B, N, C, H = 2, 8, 32, 4
    attn = SeqParallelAttention(dim=C, num_heads=H, qkv_bias=True, key=k_mod)

    # case 1: single query tile, no padding
    x1 = jax.random.normal(k_x1, (B, N, C), jnp.float32)
    out1 = jax.block_until_ready(attn(x1))
    assert out1.shape == (B, N, C), out1.shape
    ref1 = attn.reference(x1)
    err1 = float(jnp.max(jnp.abs(out1 - ref1)))
    # bf16 x / weights / attention operands vs f32 reference -> relaxed tolerance
    assert jnp.allclose(out1, ref1, atol=5e-2, rtol=5e-2), err1

    # case 2: ragged sequence + small q tile -> exercises q tiling, padding, key mask
    N2 = 20
    x2 = jax.random.normal(k_x2, (B, N2, C), jnp.float32)
    out2 = jax.block_until_ready(attn(x2, q_block=8))
    assert out2.shape == (B, N2, C), out2.shape
    ref2 = attn.reference(x2)
    err2 = float(jnp.max(jnp.abs(out2 - ref2)))
    assert jnp.allclose(out2, ref2, atol=5e-2, rtol=5e-2), err2

    print("KERNEL_OK")
</pallas_src>

<mosaic_0001>
module attributes {stable_mosaic.version = 11 : i64} {
  func.func @_sp_attention_kernel(%arg0: i32, %arg1: i32, %arg2: memref<1x8x32xbf16, #tpu.memory_space<vmem>>, %arg3: memref<4x32x128xbf16, #tpu.memory_space<vmem>>, %arg4: memref<4x32x128xbf16, #tpu.memory_space<vmem>>, %arg5: memref<4x32x128xbf16, #tpu.memory_space<vmem>>, %arg6: memref<4x1x128xf32, #tpu.memory_space<vmem>>, %arg7: memref<4x1x128xf32, #tpu.memory_space<vmem>>, %arg8: memref<4x1x128xf32, #tpu.memory_space<vmem>>, %arg9: memref<4x128x32xbf16, #tpu.memory_space<vmem>>, %arg10: memref<1x32xf32, #tpu.memory_space<vmem>>, %arg11: memref<1x8x32xf32, #tpu.memory_space<vmem>>, %arg12: memref<4x8x128xbf16, #tpu.memory_space<vmem>>, %arg13: memref<4x8x128xbf16, #tpu.memory_space<vmem>>) attributes {dimension_semantics = [#tpu.dimension_semantics<parallel>, #tpu.dimension_semantics<arbitrary>], iteration_bounds = array<i64: 2, 1>, scalar_prefetch = 0 : i64, scratch_operands = 2 : i64, tpu.core_type = #tpu.core_type<tc>, window_params = [{transform_indices = @transform_0, window_bounds = array<i64: 1, 8, 32>}, {pipeline_mode = #tpu.pipeline_mode<synchronous>, transform_indices = @transform_1, window_bounds = array<i64: 4, 32, 128>}, {pipeline_mode = #tpu.pipeline_mode<synchronous>, transform_indices = @transform_2, window_bounds = array<i64: 4, 32, 128>}, {pipeline_mode = #tpu.pipeline_mode<synchronous>, transform_indices = @transform_3, window_bounds = array<i64: 4, 32, 128>}, {pipeline_mode = #tpu.pipeline_mode<synchronous>, transform_indices = @transform_4, window_bounds = array<i64: 4, 1, 128>}, {pipeline_mode = #tpu.pipeline_mode<synchronous>, transform_indices = @transform_5, window_bounds = array<i64: 4, 1, 128>}, {pipeline_mode = #tpu.pipeline_mode<synchronous>, transform_indices = @transform_6, window_bounds = array<i64: 4, 1, 128>}, {pipeline_mode = #tpu.pipeline_mode<synchronous>, transform_indices = @transform_7, window_bounds = array<i64: 4, 128, 32>}, {pipeline_mode = #tpu.pipeline_mode<synchronous>, transform_indices = @transform_8, window_bounds = array<i64: 1, 32>}, {transform_indices = @transform_9, window_bounds = array<i64: 1, 8, 32>}]} {
    %c0_i32 = arith.constant 0 : i32
    %0 = arith.cmpi eq, %arg1, %c0_i32 : i32
    %1 = arith.extui %0 : i1 to i32
    %c0_i32_0 = arith.constant 0 : i32
    %2 = arith.cmpi ne, %1, %c0_i32_0 : i32
    scf.if %2 {
      %c0_9 = arith.constant 0 : index
      %c0_10 = arith.constant 0 : index
      %c0_11 = arith.constant 0 : index
      %15 = vector.load %arg2[%c0_9, %c0_10, %c0_11] : memref<1x8x32xbf16, #tpu.memory_space<vmem>>, vector<1x8x32xbf16>
      %16 = vector.shape_cast %15 : vector<1x8x32xbf16> to vector<8x32xbf16>
      %c0_i32_12 = arith.constant 0 : i32
      %c4_i32_13 = arith.constant 4 : i32
      %17 = arith.addi %c0_i32_12, %c4_i32_13 : i32
      %c1_i32_14 = arith.constant 1 : i32
      scf.for %arg14 = %c0_i32_12 to %17 step %c1_i32_14  : i32 {
        %c1_i32_16 = arith.constant 1 : i32
        %18 = arith.muli %arg14, %c1_i32_16 : i32
        %c0_i32_17 = arith.constant 0 : i32
        %19 = arith.addi %c0_i32_17, %18 : i32
        %20 = arith.index_cast %19 : i32 to index
        %c0_18 = arith.constant 0 : index
        %c0_19 = arith.constant 0 : index
        %21 = vector.load %arg4[%20, %c0_18, %c0_19] : memref<4x32x128xbf16, #tpu.memory_space<vmem>>, vector<1x32x128xbf16>
        %22 = vector.shape_cast %21 : vector<1x32x128xbf16> to vector<32x128xbf16>
        %cst = arith.constant dense<0.000000e+00> : vector<8x128xf32>
        %23 = tpu.matmul %16, %22, %cst {dimension_numbers = #tpu.dot_dimension_numbers<[1], [0], [0], [1], [0, 0, 1, 1], [], []>} : vector<8x32xbf16>, vector<32x128xbf16>, vector<8x128xf32> -> vector<8x128xf32>
        %24 = arith.index_cast %19 : i32 to index
        %c0_20 = arith.constant 0 : index
        %c0_21 = arith.constant 0 : index
        %25 = vector.load %arg7[%24, %c0_20, %c0_21] : memref<4x1x128xf32, #tpu.memory_space<vmem>>, vector<1x1x128xf32>
        %26 = vector.shape_cast %25 : vector<1x1x128xf32> to vector<1x128xf32>
        %27 = vector.broadcast %26 : vector<1x128xf32> to vector<8x128xf32>
        %28 = arith.addf %23, %27 : vector<8x128xf32>
        %29 = arith.truncf %28 : vector<8x128xf32> to vector<8x128xbf16>
        %30 = arith.index_cast %19 : i32 to index
        %c0_22 = arith.constant 0 : index
        %c0_23 = arith.constant 0 : index
        %31 = vector.load %arg12[%30, %c0_22, %c0_23] : memref<4x8x128xbf16, #tpu.memory_space<vmem>>, vector<1x8x128xbf16>
        %32 = vector.shape_cast %31 : vector<1x8x128xbf16> to vector<8x128xbf16>
        %33 = vector.shape_cast %29 : vector<8x128xbf16> to vector<1x8x128xbf16>
        tpu.vector_store %arg12[%30, %c0_22, %c0_23], %33 {strides = array<i32>} : memref<4x8x128xbf16, #tpu.memory_space<vmem>>, vector<1x8x128xbf16>,
        %34 = arith.index_cast %19 : i32 to index
        %c0_24 = arith.constant 0 : index
        %c0_25 = arith.constant 0 : index
        %35 = vector.load %arg5[%34, %c0_24, %c0_25] : memref<4x32x128xbf16, #tpu.memory_space<vmem>>, vector<1x32x128xbf16>
        %36 = vector.shape_cast %35 : vector<1x32x128xbf16> to vector<32x128xbf16>
        %cst_26 = arith.constant dense<0.000000e+00> : vector<8x128xf32>
        %37 = tpu.matmul %16, %36, %cst_26 {dimension_numbers = #tpu.dot_dimension_numbers<[1], [0], [0], [1], [0, 0, 1, 1], [], []>} : vector<8x32xbf16>, vector<32x128xbf16>, vector<8x128xf32> -> vector<8x128xf32>
        %38 = arith.index_cast %19 : i32 to index
        %c0_27 = arith.constant 0 : index
        %c0_28 = arith.constant 0 : index
        %39 = vector.load %arg8[%38, %c0_27, %c0_28] : memref<4x1x128xf32, #tpu.memory_space<vmem>>, vector<1x1x128xf32>
        %40 = vector.shape_cast %39 : vector<1x1x128xf32> to vector<1x128xf32>
        %41 = vector.broadcast %40 : vector<1x128xf32> to vector<8x128xf32>
        %42 = arith.addf %37, %41 : vector<8x128xf32>
        %43 = arith.truncf %42 : vector<8x128xf32> to vector<8x128xbf16>
        %44 = arith.index_cast %19 : i32 to index
        %c0_29 = arith.constant 0 : index
        %c0_30 = arith.constant 0 : index
        %45 = vector.load %arg13[%44, %c0_29, %c0_30] : memref<4x8x128xbf16, #tpu.memory_space<vmem>>, vector<1x8x128xbf16>
        %46 = vector.shape_cast %45 : vector<1x8x128xbf16> to vector<8x128xbf16>
        %47 = vector.shape_cast %43 : vector<8x128xbf16> to vector<1x8x128xbf16>
        tpu.vector_store %arg13[%44, %c0_29, %c0_30], %47 {strides = array<i32>} : memref<4x8x128xbf16, #tpu.memory_space<vmem>>, vector<1x8x128xbf16>,
      }
      %c4_i32_15 = arith.constant 4 : i32
    } else {
    }
    %c8_i32 = arith.constant 8 : i32
    %3 = arith.muli %arg1, %c8_i32 : i32
    %4 = tpu.assume_multiple %3, 8 : i32
    %c0 = arith.constant 0 : index
    %5 = arith.index_cast %4 : i32 to index
    %c0_1 = arith.constant 0 : index
    %6 = vector.load %arg2[%c0, %5, %c0_1] : memref<1x8x32xbf16, #tpu.memory_space<vmem>>, vector<1x8x32xbf16>
    %7 = vector.shape_cast %6 : vector<1x8x32xbf16> to vector<8x32xbf16>
    %c0_2 = arith.constant 0 : index
    %c0_3 = arith.constant 0 : index
    %8 = vector.load %arg10[%c0_2, %c0_3] : memref<1x32xf32, #tpu.memory_space<vmem>>, vector<1x32xf32>
    %9 = vector.shape_cast %8 : vector<1x32xf32> to vector<1x32xf32>
    %10 = vector.broadcast %9 : vector<1x32xf32> to vector<8x32xf32>
    %c0_4 = arith.constant 0 : index
    %c0_5 = arith.constant 0 : index
    %c0_6 = arith.constant 0 : index
    %11 = vector.load %arg11[%c0_4, %c0_5, %c0_6] : memref<1x8x32xf32, #tpu.memory_space<vmem>>, vector<1x8x32xf32>
    %12 = vector.shape_cast %11 : vector<1x8x32xf32> to vector<8x32xf32>
    %13 = vector.shape_cast %10 : vector<8x32xf32> to vector<1x8x32xf32>
    tpu.vector_store %arg11[%c0_4, %c0_5, %c0_6], %13 {strides = array<i32>} : memref<1x8x32xf32, #tpu.memory_space<vmem>>, vector<1x8x32xf32>,
    %c0_i32_7 = arith.constant 0 : i32
    %c4_i32 = arith.constant 4 : i32
    %14 = arith.addi %c0_i32_7, %c4_i32 : i32
    %c1_i32 = arith.constant 1 : i32
    scf.for %arg14 = %c0_i32_7 to %14 step %c1_i32  : i32 {
      %c1_i32_9 = arith.constant 1 : i32
      %15 = arith.muli %arg14, %c1_i32_9 : i32
      %c0_i32_10 = arith.constant 0 : i32
      %16 = arith.addi %c0_i32_10, %15 : i32
      %17 = arith.index_cast %16 : i32 to index
      %c0_11 = arith.constant 0 : index
      %c0_12 = arith.constant 0 : index
      %18 = vector.load %arg3[%17, %c0_11, %c0_12] : memref<4x32x128xbf16, #tpu.memory_space<vmem>>, vector<1x32x128xbf16>
      %19 = vector.shape_cast %18 : vector<1x32x128xbf16> to vector<32x128xbf16>
      %cst = arith.constant dense<0.000000e+00> : vector<8x128xf32>
      %20 = tpu.matmul %7, %19, %cst {dimension_numbers = #tpu.dot_dimension_numbers<[1], [0], [0], [1], [0, 0, 1, 1], [], []>} : vector<8x32xbf16>, vector<32x128xbf16>, vector<8x128xf32> -> vector<8x128xf32>
      %21 = arith.index_cast %16 : i32 to index
      %c0_13 = arith.constant 0 : index
      %c0_14 = arith.constant 0 : index
      %22 = vector.load %arg6[%21, %c0_13, %c0_14] : memref<4x1x128xf32, #tpu.memory_space<vmem>>, vector<1x1x128xf32>
      %23 = vector.shape_cast %22 : vector<1x1x128xf32> to vector<1x128xf32>
      %24 = vector.broadcast %23 : vector<1x128xf32> to vector<8x128xf32>
      %25 = arith.addf %20, %24 : vector<8x128xf32>
      %cst_15 = arith.constant 0.353553385 : f32
      %26 = vector.broadcast %cst_15 : f32 to vector<8x128xf32>
      %27 = arith.mulf %25, %26 : vector<8x128xf32>
      %28 = arith.truncf %27 : vector<8x128xf32> to vector<8x128xbf16>
      %29 = arith.index_cast %16 : i32 to index
      %c0_16 = arith.constant 0 : index
      %c0_17 = arith.constant 0 : index
      %30 = vector.load %arg12[%29, %c0_16, %c0_17] : memref<4x8x128xbf16, #tpu.memory_space<vmem>>, vector<1x8x128xbf16>
      %31 = vector.shape_cast %30 : vector<1x8x128xbf16> to vector<8x128xbf16>
      %cst_18 = arith.constant dense<0.000000e+00> : vector<8x8xf32>
      %32 = tpu.matmul %28, %31, %cst_18 {dimension_numbers = #tpu.dot_dimension_numbers<[1], [1], [0], [0], [0, 0, 1, 0], [], []>} : vector<8x128xbf16>, vector<8x128xbf16>, vector<8x8xf32> -> vector<8x8xf32>
      %cst_19 = arith.constant dense<0xFF800000> : vector<8xf32>
      %33 = vector.multi_reduction <maximumf>, %32, %cst_19 [1] : vector<8x8xf32> to vector<8xf32>
      %34 = vector.shape_cast %33 : vector<8xf32> to vector<8x1xf32>
      %35 = vector.broadcast %34 : vector<8x1xf32> to vector<8x8xf32>
      %36 = arith.subf %32, %35 : vector<8x8xf32>
      %37 = math.exp %36 : vector<8x8xf32>
      %cst_20 = arith.constant dense<0.000000e+00> : vector<8xf32>
      %38 = vector.multi_reduction <add>, %37, %cst_20 [1] : vector<8x8xf32> to vector<8xf32>
      %39 = vector.shape_cast %38 : vector<8xf32> to vector<8x1xf32>
      %40 = tpu.reciprocal %39 {approx = true} : vector<8x1xf32> -> vector<8x1xf32>
      %41 = vector.broadcast %40 : vector<8x1xf32> to vector<8x8xf32>
      %42 = arith.mulf %37, %41 : vector<8x8xf32>
      %43 = arith.truncf %42 : vector<8x8xf32> to vector<8x8xbf16>
      %44 = arith.index_cast %16 : i32 to index
      %c0_21 = arith.constant 0 : index
      %c0_22 = arith.constant 0 : index
      %45 = vector.load %arg13[%44, %c0_21, %c0_22] : memref<4x8x128xbf16, #tpu.memory_space<vmem>>, vector<1x8x128xbf16>
      %46 = vector.shape_cast %45 : vector<1x8x128xbf16> to vector<8x128xbf16>
      %cst_23 = arith.constant dense<0.000000e+00> : vector<8x128xf32>
      %47 = tpu.matmul %43, %46, %cst_23 {dimension_numbers = #tpu.dot_dimension_numbers<[1], [0], [0], [1], [0, 0, 1, 1], [], []>} : vector<8x8xbf16>, vector<8x128xbf16>, vector<8x128xf32> -> vector<8x128xf32>
      %c0_24 = arith.constant 0 : index
      %c0_25 = arith.constant 0 : index
      %c0_26 = arith.constant 0 : index
      %48 = vector.load %arg11[%c0_24, %c0_25, %c0_26] : memref<1x8x32xf32, #tpu.memory_space<vmem>>, vector<1x8x32xf32>
      %49 = vector.shape_cast %48 : vector<1x8x32xf32> to vector<8x32xf32>
      %50 = arith.truncf %47 : vector<8x128xf32> to vector<8x128xbf16>
      %51 = arith.index_cast %16 : i32 to index
      %c0_27 = arith.constant 0 : index
      %c0_28 = arith.constant 0 : index
      %52 = vector.load %arg9[%51, %c0_27, %c0_28] : memref<4x128x32xbf16, #tpu.memory_space<vmem>>, vector<1x128x32xbf16>
      %53 = vector.shape_cast %52 : vector<1x128x32xbf16> to vector<128x32xbf16>
      %cst_29 = arith.constant dense<0.000000e+00> : vector<8x32xf32>
      %54 = tpu.matmul %50, %53, %cst_29 {dimension_numbers = #tpu.dot_dimension_numbers<[1], [0], [0], [1], [0, 0, 1, 1], [], []>} : vector<8x128xbf16>, vector<128x32xbf16>, vector<8x32xf32> -> vector<8x32xf32>
      %55 = arith.addf %49, %54 : vector<8x32xf32>
      %c0_30 = arith.constant 0 : index
      %c0_31 = arith.constant 0 : index
      %c0_32 = arith.constant 0 : index
      %56 = vector.load %arg11[%c0_30, %c0_31, %c0_32] : memref<1x8x32xf32, #tpu.memory_space<vmem>>, vector<1x8x32xf32>
      %57 = vector.shape_cast %56 : vector<1x8x32xf32> to vector<8x32xf32>
      %58 = vector.shape_cast %55 : vector<8x32xf32> to vector<1x8x32xf32>
      tpu.vector_store %arg11[%c0_30, %c0_31, %c0_32], %58 {strides = array<i32>} : memref<1x8x32xf32, #tpu.memory_space<vmem>>, vector<1x8x32xf32>,
    }
    %c4_i32_8 = arith.constant 4 : i32
    return
  }
  func.func @transform_0(%arg0: i32, %arg1: i32) -> (i32, i32, i32) {
    %c0_i32 = arith.constant 0 : i32
    %c0_i32_0 = arith.constant 0 : i32
    %c0_i32_1 = arith.constant 0 : i32
    return %arg0, %c0_i32, %c0_i32_0 : i32, i32, i32
  }
  func.func @transform_1(%arg0: i32, %arg1: i32) -> (i32, i32, i32) {
    %c0_i32 = arith.constant 0 : i32
    %c0_i32_0 = arith.constant 0 : i32
    %c0_i32_1 = arith.constant 0 : i32
    %c0_i32_2 = arith.constant 0 : i32
    return %c0_i32, %c0_i32_0, %c0_i32_1 : i32, i32, i32
  }
  func.func @transform_2(%arg0: i32, %arg1: i32) -> (i32, i32, i32) {
    %c0_i32 = arith.constant 0 : i32
    %c0_i32_0 = arith.constant 0 : i32
    %c0_i32_1 = arith.constant 0 : i32
    %c0_i32_2 = arith.constant 0 : i32
    return %c0_i32, %c0_i32_0, %c0_i32_1 : i32, i32, i32
  }
  func.func @transform_3(%arg0: i32, %arg1: i32) -> (i32, i32, i32) {
    %c0_i32 = arith.constant 0 : i32
    %c0_i32_0 = arith.constant 0 : i32
    %c0_i32_1 = arith.constant 0 : i32
    %c0_i32_2 = arith.constant 0 : i32
    return %c0_i32, %c0_i32_0, %c0_i32_1 : i32, i32, i32
  }
  func.func @transform_4(%arg0: i32, %arg1: i32) -> (i32, i32, i32) {
    %c0_i32 = arith.constant 0 : i32
    %c0_i32_0 = arith.constant 0 : i32
    %c0_i32_1 = arith.constant 0 : i32
    %c0_i32_2 = arith.constant 0 : i32
    return %c0_i32, %c0_i32_0, %c0_i32_1 : i32, i32, i32
  }
  func.func @transform_5(%arg0: i32, %arg1: i32) -> (i32, i32, i32) {
    %c0_i32 = arith.constant 0 : i32
    %c0_i32_0 = arith.constant 0 : i32
    %c0_i32_1 = arith.constant 0 : i32
    %c0_i32_2 = arith.constant 0 : i32
    return %c0_i32, %c0_i32_0, %c0_i32_1 : i32, i32, i32
  }
  func.func @transform_6(%arg0: i32, %arg1: i32) -> (i32, i32, i32) {
    %c0_i32 = arith.constant 0 : i32
    %c0_i32_0 = arith.constant 0 : i32
    %c0_i32_1 = arith.constant 0 : i32
    %c0_i32_2 = arith.constant 0 : i32
    return %c0_i32, %c0_i32_0, %c0_i32_1 : i32, i32, i32
  }
  func.func @transform_7(%arg0: i32, %arg1: i32) -> (i32, i32, i32) {
    %c0_i32 = arith.constant 0 : i32
    %c0_i32_0 = arith.constant 0 : i32
    %c0_i32_1 = arith.constant 0 : i32
    %c0_i32_2 = arith.constant 0 : i32
    return %c0_i32, %c0_i32_0, %c0_i32_1 : i32, i32, i32
  }
  func.func @transform_8(%arg0: i32, %arg1: i32) -> (i32, i32) {
    %c0_i32 = arith.constant 0 : i32
    %c0_i32_0 = arith.constant 0 : i32
    %c0_i32_1 = arith.constant 0 : i32
    return %c0_i32, %c0_i32_0 : i32, i32
  }
  func.func @transform_9(%arg0: i32, %arg1: i32) -> (i32, i32, i32) {
    %c0_i32 = arith.constant 0 : i32
    %c0_i32_0 = arith.constant 0 : i32
    return %arg0, %arg1, %c0_i32 : i32, i32, i32
  }
}

</mosaic_0001>

<bundles_post_ra>
// kernel: tpu_custom_call.1
= control target key start
LH: loop header
LB: loop body
LE: loop exit
PB: predicated region body
PF: predicated region fallthrough
CT: control target
= control target key end

     0   :  { %s1506_s0 = inlined_call_operand.vmem [shape: bf16[2,8,32], index: 0, kind: input, shape index: {}]   ;;  %s1507_s1 = inlined_call_operand.vmem [shape: bf16[4,32,128], index: 1, kind: input, shape index: {}]   ;;  %s1508_s2 = inlined_call_operand.vmem [shape: bf16[4,32,128], index: 2, kind: input, shape index: {}]   ;;  %s1509_s3 = inlined_call_operand.vmem [shape: bf16[4,32,128], index: 3, kind: input, shape index: {}]   ;;  %s1510_s4 = inlined_call_operand.vmem [shape: f32[4,1,128], index: 4, kind: input, shape index: {}]   ;;  %s1511_s5 = inlined_call_operand.vmem [shape: f32[4,1,128], index: 5, kind: input, shape index: {}]   ;;  %s1512_s6 = inlined_call_operand.vmem [shape: f32[4,1,128], index: 6, kind: input, shape index: {}]   ;;  %s1513_s7 = inlined_call_operand.vmem [shape: bf16[4,128,32], index: 7, kind: input, shape index: {}]   ;;  %s1514_s8 = inlined_call_operand.vmem [shape: f32[1,32], index: 8, kind: input, shape index: {}]   ;;  %s1515_s9 = inlined_call_operand.hbm [shape: f32[2,8,32], index: 9, kind: output, shape index: {}]  }
   0x1   :  { %1517 = sst [smem:[#allocation7_spill]] %s1506_s0 }
   0x2   :  { %14 = vsyncpa [#allocation5], 0 }
   0x3   :  { %16 = vsyncpa [#allocation5 + $0x1], 0  ;;  %s1293_s30 = smov 0   ;;  %s1295_s10 = smov 0  }
   0x4   :  { %s1297_s11 = smov 0   ;;  %s1299_s12 = smov 0  }
   0x5   :  { %s1301_s13 = smov 0   ;;  %s1303_s14 = smov 0  }
   0x6 LB: > { %s923_s15 = sadd.s32 4294967295, %s1228_s14   ;;  %s924_s16 = sadd.s32 4294967294, %s1228_s14   ;;  %s1228_s14 = sphi %s1303_s14, %s22_s14   ;;  %s1224_s13 = sphi %s1301_s13, %s1526_s13   ;;  %s1220_s12 = sphi %s1299_s12, %s1525_s12   ;;  %s1216_s11 = sphi %s1297_s11, %s1524_s11   ;;  %s1212_s10 = sphi %s1295_s10, %s1523_s10   ;;  %s1208_s30 = sphi %s1293_s30, %s1522_s30  }
   0x7   : > { %s34_s17 = sadd.s32 1, %s1224_s13  ;;  %s237_s18 = sadd.s32 1, %s1216_s11 }
   0x8   : > { %p36_p0 = scmp.ge.s32.totalorder %s34_s17, 2  ;;  %p247_p1 = scmp.ne.s32.totalorder %s1216_s11, %s1212_s10 }
   0x9   : > { %p248_p2 = scmp.eq.s32.totalorder %s923_s15, 1  ;;  %p253_p3 = scmp.ne.s32.totalorder %s1212_s10, %s1208_s30 }
   0xa   : > { %s1528_s17 = smov (%p36_p0, %s34_s17), 0  ;;  %p254_p5 = scmp.eq.s32.totalorder %s924_s16, 1 }
   0xb   : > { %p1333_p4 = por %p248_p2, %p247_p1  ;;  %s232_s20 = ssub.s32 %s1224_s13, %s1528_s17 }
   0xc   : > { %p927_p6 = scmp.ge.s32.totalorder %s1228_s14, 1  ;;  %p235_p7 = scmp.eq.s32.totalorder %s232_s20, 0 }
   0xd   : > { %p1340_p8 = por %p254_p5, %p253_p3  ;;  %p303_p9 = scmp.lt.s32.totalorder %s1228_s14, 3 }
   0xe   : > { %s1346_s22 = scalar_select %p235_p7, %s1216_s11, %s237_s18  }
   0xf   : > { %p304_p10 = pnand %p927_p6, %p303_p9 }
  0x10   : > { %s1516_s23 = sand.u32 (!%p304_p10), 1, %s1212_s10   ;;  %p338_p11 = scmp.lt.s32.totalorder (!%p304_p10), %s1220_s12, 1 }
  0x11   : > { %307 = sbr.rel (%p304_p10) target bundleno = 1455 (0x5af), region = 56  ;;  %s928_s24 = sshll.u32 (!%p304_p10), %s1516_s23, 3 }
  0x12   : > { %s1520_s0 = sld [smem:[#allocation7_spill]] (!%p304_p10)  ;;  %s1359_s15 = scalar_lea.vmem (!%p304_p10), [#allocation4], %s928_s24 }
  0x13   : > { %s1361_s16 = smov (!%p304_p10), 0  }
  0x18   : > { %s339_s25 = scalar_select %p338_p11, %s1220_s12, 1 }
  0x1a   : > { %s929_s26 = sshll.u32 %s339_s25, 2 }
  0x1b   : > { %s1356_s29 = scalar_lea.vmem %s1520_s0, %s929_s26 }
  0x1c   : > { %v347_v0 = vld [vmem:[%s1356_s29] sm:$0xf] }
  0x1d LB: >> { %v1238_v1 = vmov 0.0   ;;  %s967_s18 = sshll.u32 %s1232_s16, 4  ;;  %vm1239_vm0 = vmmov 0   ;;  %vm381_vm1 = vcmask 261120   ;;  %s435_s23 = scalar_lea.vmem %s1512_s6, %s1232_s16  ;;  %s1232_s16 = sphi %s1361_s16, %s353_s16  }
  0x1e   : >> { %993 = vmatprep.subr.bf16.mxu0 %v1238_v1  ;;  %1001 = vmatprep.subr.bf16.mxu1 %v1238_v1  ;;  %s356_s24 = scalar_lea.vmem %s1508_s2, %s967_s18  ;;  %s430_s28 = scalar_lea.vmem %s1509_s3, %s967_s18  ;;  %v938_v7 = vld [vmem:[%s435_s23] ss:$0 sm:$0xff] }
  0x1f   : >> { %997 = vmatprep.mubr.msk.bf16.mxu0 %vm1239_vm0, %v1238_v1  ;;  %1005 = vmatprep.mubr.msk.bf16.mxu1 %vm1239_vm0, %v1238_v1  ;;  %v1124_v2 = vld [vmem:[%s356_s24] sm:$0xff]   ;;  %v1126_v4 = vld [vmem:[%s356_s24 + $0x8] sm:$0xff]   ;;  %s361_s18 = scalar_lea.vmem %s1511_s5, %s1232_s16  ;;  %s936_s24 = sshll.u32 %s1232_s16, 2 }
  0x20   : >> { %v1125_v3 = vld [vmem:[%s430_s28] sm:$0xff]   ;;  %994 = vmatpush3.bf16.msra.mxu0 %v1124_v2  ;;  %v1127_v5 = vld [vmem:[%s430_s28 + $0x8] sm:$0xff]   ;;  %s427_s28 = scalar_lea.vmem [#allocation2], %s936_s24  ;;  %s497_s20 = scalar_lea.vmem [#allocation3], %s936_s24 }
  0x21   : >> { %1002 = vmatpush3.bf16.msra.mxu1 %v1125_v3  ;;  %995 = vmatprep.subr.bf16.mxu0 %v1238_v1  ;;  %v932_v6 = vld [vmem:[%s361_s18] ss:$0 sm:$0xff]  ;;  %s353_s16 = sadd.s32 1, %s1232_s16  }
  0x22   : >> { %1003 = vmatprep.subr.bf16.mxu1 %v1238_v1  ;;  %p350_p12 = scmp.ge.s32.totalorder %s353_s16, 4  }
  0x23   : > { %v1388_v20 = vld [vmem:[%s1356_s29] sm:$0xf] (%p350_p12)  ;;  %s1395_s18 = smov (%p350_p12), 0  }
  0x24   : >> { %996 = vmatpush3.bf16.msra.mxu0 %v1126_v4  ;;  %v943_v21 = vld [vmem:[%s1514_s8] ss:$0 sm:$0xff] (%p350_p12) }
  0x25   : >> { %1004 = vmatpush3.bf16.msra.mxu1 %v1127_v5  ;;  %513 = vst.msk [vmem:[%s1359_s15] sm:$0xff] (%p350_p12), %vm381_vm1, %v943_v21 }
  0x27   : >> { %998 = vmatmul.mubr.msk.bf16.vlgmr.msra.gmra.mrb[0].mxu0 %vm381_vm1, %v347_v0 }
  0x28   : >> { %1006 = vmatmul.mubr.msk.bf16.vlgmr.msra.gmra.mrb[0].mxu1 %vm381_vm1, %v347_v0 }
  0xfa   : >> { %v419_v8 = vpop.f32.mrb[0].mxu0  ;;  %352 = sbr.rel (!%p350_p12) target bundleno = 29 (0x1d), region = 121 }
  0xfb   : >> { %v420_v9 = vadd.f32 %v932_v6, %v419_v8  ;;  %v489_v10 = vpop.f32.mrb[0].mxu1  ;;  %v999_v11 = vpop.f32.mrb[1].mxu0 }
  0xfc   : >> { %v490_v12 = vadd.f32 %v938_v7, %v489_v10  ;;  %v1007_v13 = vpop.f32.mrb[1].mxu1  ;;  %v422_v14 = vpop.f32.mrb[2].mxu0 }
  0xfd   : >> { %v425_v15 = vpack.c.bf16 %v420_v9, %v420_v9  ;;  %v492_v16 = vpop.f32.mrb[2].mxu1  ;;  %v1000_v17 = vpop.f32.mrb[3].mxu0 }
  0xfe   : >> { %v495_v18 = vpack.c.bf16 %v490_v12, %v490_v12  ;;  %v1008_v19 = vpop.f32.mrb[3].mxu1 }
  0xff   : >> { %428 = vst [vmem:[%s427_s28] sm:$0xf] %v425_v15 }
 0x100   : >> { %498 = vst [vmem:[%s497_s20] sm:$0xf] %v495_v18 }
 0x101 LB: >> { %v1240_v22 = vmov 0.0   ;;  %vm1241_vm2 = vmmov 0   ;;  %s969_s29 = sshll.u32 %s1236_s18, 4  ;;  %s970_s16 = sshll.u32 %s1236_s18, 6  ;;  %vm635_vm3 = vcmask 64512   ;;  %vm654_vm4 = vcmask 1043456   ;;  %s1236_s18 = sphi %s1395_s18, %s519_s18  }
 0x102   : >> { %1009 = vmatprep.subr.bf16.mxu0 %v1240_v22  ;;  %1013 = vmatprep.mubr.msk.bf16.mxu0 %vm1241_vm2, %v1240_v22  ;;  %s522_s24 = scalar_lea.vmem %s1507_s1, %s969_s29  ;;  %s1414_s23 = scalar_lea.vmem %s1513_s7, %s970_s16  ;;  %v698_v63 = vld [vmem:[%s1359_s15] sm:$0xff] }
 0x103   : >> { %1029 = vmatprep.subr.bf16.mxu1 %v1240_v22  ;;  %1045 = vmatprep.mubr.msk.bf16.mxu1 %vm1241_vm2, %v1240_v22  ;;  %v1128_v23 = vld [vmem:[%s522_s24] sm:$0xff]   ;;  %v1129_v24 = vld [vmem:[%s522_s24 + $0x8] sm:$0xff]   ;;  %s950_s25 = sshll.u32 %s1236_s18, 2  ;;  %s527_s27 = scalar_lea.vmem %s1510_s4, %s1236_s18  ;;  %v1132_v48 = vld [vmem:[%s1414_s23 + $0x10] sm:$0xff]  }
 0x104   : >> { %1010 = vmatpush3.bf16.msra.mxu0 %v1128_v23  ;;  %s593_s29 = scalar_lea.vmem [#allocation2], %s950_s25  ;;  %v946_v26 = vld [vmem:[%s527_s27] ss:$0 sm:$0xff]  ;;  %s649_s24 = scalar_lea.vmem [#allocation3], %s950_s25  ;;  %v1131_v47 = vld [vmem:[%s1414_s23 + $0x8] sm:$0xff]   ;;  %v1133_v49 = vld [vmem:[%s1414_s23 + $0x18] sm:$0xff]  }
 0x105   : >> { %1011 = vmatprep.subr.bf16.mxu0 %v1240_v22  ;;  %v1130_v46 = vld [vmem:[%s1414_s23] sm:$0xff]   ;;  %v1135_v51 = vld [vmem:[%s1414_s23 + $0x28] sm:$0xff]   ;;  %v1136_v52 = vld [vmem:[%s1414_s23 + $0x30] sm:$0xff]   ;;  %s519_s18 = sadd.s32 1, %s1236_s18  }
 0x106   : >> { %v594_v25 = vld [vmem:[%s593_s29] sm:$0xf]  ;;  %1030 = vmatpush3.bf16.msra.mxu1 %v1130_v46  ;;  %v1137_v57 = vld [vmem:[%s1414_s23 + $0x38] sm:$0xff]   ;;  %p516_p13 = scmp.ge.s32.totalorder %s519_s18, 4  }
 0x107   : >> { %v650_v44 = vld [vmem:[%s649_s24] sm:$0xf]  ;;  %1031 = vmatprep.subr.bf16.mxu1 %v1240_v22  ;;  %s964_s28 = sshll.u32 (%p516_p13), %s1220_s12, 7  ;;  %s824_s29 = sshll.u32 (%p516_p13), %s1359_s15, 4  ;;  %s825_s29 = int_to_ptr.vmem [resolvable:$true] %s824_s29 }
 0x108   : >> { %1012 = vmatpush3.bf16.msra.mxu0 %v1129_v24  ;;  %v656_v45 = vsel %vm654_vm4, %v650_v44, 0  ;;  %v1134_v50 = vld [vmem:[%s1414_s23 + $0x20] sm:$0xff]   ;;  %s1462_s25 = scalar_lea.hbm (%p516_p13), %s1515_s9, %s964_s28  ;;  %s1521_s16 = sand.u32 (%p516_p13), 1, %s1212_s10  }
 0x109   : >> { %1017 = vmatprep.subr.bf16.mxu0 %v1240_v22  ;;  %s810_s26 = scalar_lea.sflag (%p516_p13), [#allocation5], %s1521_s16  ;;  %s1142_s27 = scalar_lea.vmem (%p516_p13), %s825_s29, 128 }
 0x10a   : >> { %1032 = vmatpush3.bf16.msra.mxu1 %v1131_v47  ;;  %p1143_p0 = scmp.ne.s32.totalorder (%p516_p13), %s825_s29, %s1142_s27  ;;  %s1242_s18 = smov (%p516_p13), [#allocation4]  }
 0x10b   : >> { %1014 = vmatmul.mubr.msk.bf16.vlgmr.msra.gmra.mrb[0].mxu0 %vm381_vm1, %v1388_v20  ;;  %1033 = vmatprep.subr.bf16.mxu1 %v1240_v22  ;;  %s1146_s24 = sshll.u32 (%p516_p13), %s1242_s18, 4  ;;  %s1147_s24 = int_to_ptr.vmem [resolvable:$false] %s1146_s24 }
 0x10c   : >> { %1019 = vmatprep.mubr.msk.bf16.mxu0 %vm1241_vm2, %v1240_v22  ;;  %p1144_p1 = pnand (%p516_p13), %p1143_p0, %p1333_p4  ;;  %s1148_s0 = scalar_lea.vmem (%p516_p13), %s1147_s24, 256 }
 0x10d   : > { %p1149_p3 = scmp.lt.s32.totalorder (%p516_p13), %s825_s29, %s1147_s24  ;;  %p1150_p5 = scmp.lt.s32.totalorder (%p516_p13), %s1148_s0, %s1142_s27 }
 0x10e   : >> { %1034 = vmatpush3.bf16.msra.mxu1 %v1132_v48  ;;  %p1145_p2 = pneg (%p516_p13), %p1144_p1 }
 0x10f   : >> { %1035 = vmatprep.subr.bf16.mxu1 %v1240_v22  ;;  %p1151_p6 = por (%p516_p13), %p1150_p5, %p1149_p3 }
 0x111   : >> { %1018 = vmatpush3.bf16.xpose.msra.mxu0 %v594_v25  ;;  %p1152_p7 = pnand (%p516_p13), %p1151_p6, %p1145_p2 }
 0x112   : >> { %1023 = vmatprep.subr.bf16.mxu0 %v1240_v22  ;;  %1036 = vmatpush3.bf16.msra.mxu1 %v1133_v49 }
 0x113   : >> { %1037 = vmatprep.subr.bf16.mxu1 %v1240_v22 }
 0x116   : >> { %1038 = vmatpush3.bf16.msra.mxu1 %v1134_v50 }
 0x117   : >> { %1039 = vmatprep.subr.bf16.mxu1 %v1240_v22 }
 0x11a   : >> { %1040 = vmatpush3.bf16.msra.mxu1 %v1135_v51 }
 0x11b   : >> { %1041 = vmatprep.subr.bf16.mxu1 %v1240_v22 }
 0x11e   : >> { %1042 = vmatpush3.bf16.msra.mxu1 %v1136_v52 }
 0x11f   : >> { %1043 = vmatprep.subr.bf16.mxu1 %v1240_v22 }
 0x122   : >> { %1044 = vmatpush3.bf16.msra.mxu1 %v1137_v57 }
 0x1de   : >> { %v584_v27 = vpop.f32.mrb[0].mxu0 }
 0x1df   : >> { %v585_v28 = vadd.f32 %v946_v26, %v584_v27  ;;  %v1015_v29 = vpop.f32.mrb[1].mxu0 }
 0x1e0   : >> { %v587_v30 = vpop.f32.mrb[2].mxu0 }
 0x1e1   : >> { %v590_v31 = vmul.f32 0.35355338, %v585_v28  ;;  %v1016_v32 = vpop.f32.mrb[3].mxu0 }
 0x1e3   : >> { %v591_v33 = vpack.c.bf16 %v590_v31, %v590_v31 }
 0x1e5   : >> { %1020 = vmatmul.mubr.bf16.vlgmr.msra.gmra.mrb[4].mxu0 %v591_v33 }
 0x1e6   : >> { %1025 = vmatprep.mubr.msk.bf16.mxu0 %vm1241_vm2, %v1240_v22  ;;  %1024 = vmatpush3.bf16.msra.mxu0 %v656_v45 }
 0x2b8   : >> { %v629_v34 = vpop.f32.mrb[4].mxu0 }
 0x2b9   : >> { %v1021_v35 = vpop.f32.mrb[5].mxu0  ;;  %v636_v36 = vsel %vm635_vm3, %v629_v34, -inf }
 0x2ba   : >> { %637 = vmax.xlane.f32.xlu0 %v636_v36  ;;  %v632_v37 = vpop.f32.mrb[6].mxu0 }
 0x2bb   : >> { %v1022_v38 = vpop.f32.mrb[7].mxu0 }
 0x347   : >> { %v638_v39 = vpop.xlane.xlu0 %637 }
 0x348   : >> { %v639_v40 = vsub.f32 %v629_v34, %v638_v39 }
 0x34a   : >> { %v640_v41 = vmul.f32 1.442695, %v639_v40 }
 0x34c   : >> { %1138 = vpow2.f32 %v640_v41 }
 0x356   : >> { %v1139_v42 = vpop.eup %1138 }
 0x357   : >> { %v642_v43 = vsel %vm635_vm3, %v1139_v42, 0.0 }
 0x358   : >> { %643 = vadd.xlane.f32.xlu0 %v642_v43 }
 0x3e5   : >> { %v644_v53 = vpop.xlane.xlu0 %643 }
 0x3e6   : >> { %1140 = vrcp.f32 %v644_v53 }
 0x3f0   : >> { %v1141_v54 = vpop.eup %1140 }
 0x3f1   : >> { %v646_v55 = vmul.f32 %v1141_v54, %v1139_v42 }
 0x3f3   : >> { %v647_v56 = vpack.c.bf16 %v646_v55, %v646_v55 }
 0x3f5   : >> { %1026 = vmatmul.mubr.msk.bf16.vlgmr.msra.gmra.mrb[8].mxu0 %vm635_vm3, %v647_v56 }
 0x4c8   : >> { %v692_v58 = vpop.f32.mrb[8].mxu0 }
 0x4c9   : >> { %v699_v59 = vpack.c.bf16 %v692_v58, %v692_v58  ;;  %v1027_v60 = vpop.f32.mrb[9].mxu0 }
 0x4ca   : >> { %v695_v61 = vpop.f32.mrb[10].mxu0 }
 0x4cb   : >> { %v1028_v62 = vpop.f32.mrb[11].mxu0  ;;  %1046 = vmatmul.mubr.bf16.vlgmr.msra.gmra.mrb[0].mxu1 %v699_v59 }
 0x59b   : > { %518 = sbr.rel (!%p516_p13) target bundleno = 257 (0x101), region = 132 }
 0x59e   : >> { %v801_v0 = vpop.f32.mrb[0].mxu1 }
 0x59f   : >> { %v807_v1 = vadd.f32 %v801_v0, %v698_v63  ;;  %v1047_v2 = vpop.f32.mrb[1].mxu1 }
 0x5a0   : >> { %v804_v3 = vpop.f32.mrb[2].mxu1 }
 0x5a1   : >> { %808 = vst.msk [vmem:[%s1359_s15] sm:$0xff] %vm381_vm1, %v807_v1  ;;  %v1048_v4 = vpop.f32.mrb[3].mxu1 }
 0x5a2   : > { %1155 = shalt.err (!%p1152_p7)
}
 0x5a3   : > { %s1156_s12 = scalar_lea.hbm %s1462_s25, 128  ;;  %s1160_s20 = scalar_lea.hbm %s1515_s9, 256 }
 0x5a4   : > { %p1157_p9 = scmp.ne.s32.totalorder %s1462_s25, %s1156_s12  ;;  %p1161_p12 = scmp.lt.u32.totalorder %s1462_s25, %s1515_s9 }
 0x5a5   : > { %p1162_p13 = scmp.lt.u32.totalorder %s1160_s20, %s1156_s12  ;;  %p1164_p1 = scmp.lt.u32.totalorder %s1156_s12, %s1462_s25 }
 0x5a6   : > { %p1158_p10 = pnand %p1157_p9, %p1333_p4 }
 0x5a7   : > { %p1163_p0 = por %p1162_p13, %p1161_p12 }
 0x5a8   : > { %p1159_p11 = pneg %p1158_p10 }
 0x5a9   : > { %p1165_p2 = por %p1164_p1, %p1163_p0 }
 0x5ab   : > { %p1166_p3 = pnand %p1165_p2, %p1159_p11 }
 0x5ad   : > { %1169 = shalt.err (!%p1166_p3)
}
 0x5ae   : > { %1049 = dma.vmem_to_hbm [thread:$0]  (%p1333_p4), %s825_s29, 128, %s1462_s25, %s810_s26  }
 0x5af PF: > { %p1055_p5 = scmp.ge.s32.totalorder %s1228_s14, 2  ;;  %s836_s0 = sand.u32 1, %s1208_s30  }
 0x5b0   : > { %s837_s27 = scalar_lea.sflag [#allocation5], %s836_s0 }
 0x5b1   : > { %p1052_p6 = pnand %p1055_p5, %p1340_p8 }
 0x5b3   : > { %1203 = dma.done.wait (!%p1052_p6), %s837_s27, 128  }
 0x5b4   : > { %1205 = vsyncadd (!%p1052_p6), %s837_s27, 4294967168  ;;  %s22_s14 = sadd.s32 1, %s1228_s14   ;;  %s1522_s30 = smov %s1212_s10 }
 0x5b5   : > { %p19_p7 = scmp.ge.s32.totalorder %s22_s14, 4   ;;  %s1523_s10 = smov %s1216_s11 }
 0x5b6   : > { %s1524_s11 = smov %s1346_s22  ;;  %s1525_s12 = smov %s1224_s13 }
 0x5b7   : > { %s1526_s13 = smov %s1528_s17  ;;  %21 = sbr.rel (!%p19_p7) target bundleno = 6 (0x6), region = 143 }
 0x5be   :  { %842 = vsyncpa [#allocation5], 1 }
 0x5bf   :  { %844 = vsyncpa [#allocation5 + $0x1], 1 }

</bundles_post_ra>
